<compile_context>
chip_gen: v7x
topology: tpu7x:2x2x1
jax: 0.10.0
libtpu: 0.0.40
codegen_flags: <defaults>
</compile_context>

<pallas_src>
import functools

import jax
import jax.numpy as jnp
from jax import lax
from jax.experimental import pallas as pl
from jax.experimental.pallas import tpu as pltpu

LANE = 128


def _round_up(n, m):
    return ((n + m - 1) // m) * m


# ---------------------------------------------------------------------------
# Fused kernel: conv-as-matmul + ReLU + GAP + bottleneck(+folded BN) + head
# ---------------------------------------------------------------------------
def _fused_mdd_kernel(p_ref, pool_ref, cw_ref, cb_ref,
                      w1_ref, b1_ref, w2_ref, b2_ref, w3_ref, b3_ref,
                      o_ref):
    # backbone stand-in: (B*HW, K) @ (K, Fp) + bias -> ReLU   (f32 elementwise)
    acts = jnp.dot(p_ref[...], cw_ref[...], preferred_element_type=jnp.float32)
    acts = jnp.maximum(acts + cb_ref[...], 0.0)                       # (B*HW, Fp)

    # global average pool as a pooling matmul: (B, B*HW) @ (B*HW, Fp) -> (B, Fp)
    feat = jnp.dot(pool_ref[...], acts.astype(jnp.bfloat16),
                   preferred_element_type=jnp.float32)

    # bottleneck: Linear (eval-BN folded into w1/b1) + ReLU + Dropout(identity)
    h = jnp.dot(feat.astype(jnp.bfloat16), w1_ref[...],
                preferred_element_type=jnp.float32) + b1_ref[...]
    h = jnp.maximum(h, 0.0)

    # head: Linear(width=1024) + ReLU + Dropout(identity) + Linear(n_classes, padded)
    h2 = jnp.dot(h.astype(jnp.bfloat16), w2_ref[...],
                 preferred_element_type=jnp.float32) + b2_ref[...]
    h2 = jnp.maximum(h2, 0.0)
    o_ref[...] = (jnp.dot(h2.astype(jnp.bfloat16), w3_ref[...],
                          preferred_element_type=jnp.float32) + b3_ref[...])


# ---------------------------------------------------------------------------
# im2col for the 3x3 conv stand-in backbone (NCHW input, padding=1)
# TODO(synk): for realistic 224x224 inputs, replace this HBM-side 9x im2col blowup
#             with in-kernel shifted slices of a DMA'd padded image tile.
# ---------------------------------------------------------------------------
def im2col_3x3(x_nchw):
    B, C, H, W = x_nchw.shape
    xp = jnp.pad(x_nchw, ((0, 0), (0, 0), (1, 1), (1, 1)))
    # patch order (c, kh, kw) matches PyTorch weight.reshape(F, C*3*3)
    patches = jnp.stack(
        [xp[:, :, kh:kh + H, kw:kw + W] for kh in range(3) for kw in range(3)],
        axis=2)                                                        # (B, C, 9, H, W)
    patches = patches.reshape(B, C * 9, H, W)
    patches = patches.transpose(0, 2, 3, 1).reshape(B, H * W, C * 9)   # (B, HW, C*9)
    return patches


# ---------------------------------------------------------------------------
# Full model wrapper (eval-mode forward of tlibClassifiermdd)
# ---------------------------------------------------------------------------
def tlib_classifier_mdd_forward(x_nchw, params, *, n_classes):
    B, C, H, W = x_nchw.shape
    HW = H * W
    K = C * 9

    patches = im2col_3x3(x_nchw.astype(jnp.float32))
    patches = patches.reshape(B * HW, K).astype(jnp.bfloat16)          # (B*HW, K)
    # GAP pooling matrix: row b averages rows [b*HW, (b+1)*HW)
    pool = (jnp.repeat(jnp.eye(B, dtype=jnp.float32), HW, axis=1) / HW
            ).astype(jnp.bfloat16)                                     # (B, B*HW)

    Fp = params["conv_w"].shape[1]       # padded backbone feature dim (128)
    D1 = params["w1"].shape[1]           # bottleneck_dim
    W2 = params["w2"].shape[1]           # width
    Cp = params["w3"].shape[1]           # padded n_classes (128)

    inputs = (patches, pool, params["conv_w"], params["conv_b"],
              params["w1"], params["b1"], params["w2"], params["b2"],
              params["w3"], params["b3"])

    flops = 2 * (B * HW * K * Fp + B * (B * HW) * Fp
                 + B * Fp * D1 + B * D1 * W2 + B * W2 * Cp)
    bytes_accessed = (sum(int(a.size) * a.dtype.itemsize for a in inputs)
                      + B * Cp * 4)

    out_pad = pl.pallas_call(
        _fused_mdd_kernel,
        out_shape=jax.ShapeDtypeStruct((B, Cp), jnp.float32),
        in_specs=[pl.BlockSpec(memory_space=pltpu.MemorySpace.VMEM)] * len(inputs),
        out_specs=pl.BlockSpec(memory_space=pltpu.MemorySpace.VMEM),
        cost_estimate=pl.CostEstimate(flops=flops, transcendentals=0,
                                      bytes_accessed=bytes_accessed),
    )(*inputs)

    # GRL is identity in the forward pass; eval mode returns only the main head.
    # TODO(synk): training-mode also returns the adversarial-head logits (same
    #             structure on GRL features) and active Dropout; omitted here.
    return out_pad[:, :n_classes]


# ---------------------------------------------------------------------------
# Parameter construction: random weights, eval-BN folded, lane padding, bf16 cast
# ---------------------------------------------------------------------------
def prepare_params(key, c_in=3, feat=32, bottleneck_dim=128, width=1024, n_classes=10):
    ks = jax.random.split(key, 12)
    conv_w = jax.random.normal(ks[0], (feat, c_in, 3, 3), jnp.float32) * 0.1
    conv_b = jax.random.normal(ks[1], (feat,), jnp.float32) * 0.05
    w1 = jax.random.normal(ks[2], (feat, bottleneck_dim), jnp.float32) * 0.05
    b1 = jax.random.normal(ks[3], (bottleneck_dim,), jnp.float32) * 0.05
    bn_g = 1.0 + 0.1 * jax.random.normal(ks[4], (bottleneck_dim,), jnp.float32)
    bn_b = 0.1 * jax.random.normal(ks[5], (bottleneck_dim,), jnp.float32)
    bn_mu = 0.1 * jax.random.normal(ks[6], (bottleneck_dim,), jnp.float32)
    bn_var = 1.0 + jax.nn.softplus(
        jax.random.normal(ks[7], (bottleneck_dim,), jnp.float32))
    w2 = jax.random.normal(ks[8], (bottleneck_dim, width), jnp.float32) * 0.03
    b2 = jax.random.normal(ks[9], (width,), jnp.float32) * 0.05
    w3 = jax.random.normal(ks[10], (width, n_classes), jnp.float32) * 0.03
    b3 = jax.random.normal(ks[11], (n_classes,), jnp.float32) * 0.05

    # Fold eval-mode BatchNorm1d(running stats) into the bottleneck Linear.
    scale = bn_g * lax.rsqrt(bn_var + 1e-5)
    w1f = w1 * scale[None, :]
    b1f = (b1 - bn_mu) * scale + bn_b

    # Zero-pad feature / class dims to 128 lanes (exact: padded rows/cols are 0).
    feat_p = _round_up(feat, LANE)
    cls_p = _round_up(n_classes, LANE)
    cw = conv_w.reshape(feat, c_in * 9).T                              # (K, F)
    cw = jnp.pad(cw, ((0, 0), (0, feat_p - feat)))
    cb = jnp.pad(conv_b, (0, feat_p - feat))[None, :]
    w1p = jnp.pad(w1f, ((0, feat_p - feat), (0, 0)))
    w3p = jnp.pad(w3, ((0, 0), (0, cls_p - n_classes)))
    b3p = jnp.pad(b3, (0, cls_p - n_classes))[None, :]

    return {
        "conv_w": cw.astype(jnp.bfloat16),   # (K, Fp)
        "conv_b": cb,                        # (1, Fp)  f32
        "w1": w1p.astype(jnp.bfloat16),      # (Fp, D1)
        "b1": b1f[None, :],                  # (1, D1)  f32 (BN folded)
        "w2": w2.astype(jnp.bfloat16),       # (D1, width)
        "b2": b2[None, :],                   # (1, width) f32
        "w3": w3p.astype(jnp.bfloat16),      # (width, Cp)
        "b3": b3p,                           # (1, Cp)  f32
    }


if __name__ == "__main__":
    key = jax.random.PRNGKey(0)
    k_x, k_p = jax.random.split(key)
    B, C_in, H, W = 2, 3, 16, 16
    n_classes = 10
    x = jax.random.normal(k_x, (B, C_in, H, W), jnp.float32)           # NCHW like PyTorch
    params = prepare_params(k_p, c_in=C_in, n_classes=n_classes)

    fwd = jax.jit(functools.partial(tlib_classifier_mdd_forward, n_classes=n_classes))
    out = jax.block_until_ready(fwd(x, params))
    assert out.shape == (B, n_classes) and bool(jnp.all(jnp.isfinite(out)))
    print("KERNEL_OK")
</pallas_src>

<mosaic_0001>
module attributes {stable_mosaic.version = 11 : i64} {
  func.func @_fused_mdd_kernel(%arg0: memref<512x27xbf16, #tpu.memory_space<vmem>>, %arg1: memref<2x512xbf16, #tpu.memory_space<vmem>>, %arg2: memref<27x128xbf16, #tpu.memory_space<vmem>>, %arg3: memref<1x128xf32, #tpu.memory_space<vmem>>, %arg4: memref<128x128xbf16, #tpu.memory_space<vmem>>, %arg5: memref<1x128xf32, #tpu.memory_space<vmem>>, %arg6: memref<128x1024xbf16, #tpu.memory_space<vmem>>, %arg7: memref<1x1024xf32, #tpu.memory_space<vmem>>, %arg8: memref<1024x128xbf16, #tpu.memory_space<vmem>>, %arg9: memref<1x128xf32, #tpu.memory_space<vmem>>, %arg10: memref<2x128xf32, #tpu.memory_space<vmem>>) attributes {dimension_semantics = [], scalar_prefetch = 0 : i64, scratch_operands = 0 : i64, tpu.core_type = #tpu.core_type<tc>} {
    %c0 = arith.constant 0 : index
    %c0_0 = arith.constant 0 : index
    %0 = vector.load %arg0[%c0, %c0_0] : memref<512x27xbf16, #tpu.memory_space<vmem>>, vector<512x27xbf16>
    %c0_1 = arith.constant 0 : index
    %c0_2 = arith.constant 0 : index
    %1 = vector.load %arg2[%c0_1, %c0_2] : memref<27x128xbf16, #tpu.memory_space<vmem>>, vector<27x128xbf16>
    %cst = arith.constant dense<0.000000e+00> : vector<512x128xf32>
    %2 = tpu.matmul %0, %1, %cst {dimension_numbers = #tpu.dot_dimension_numbers<[1], [0], [0], [1], [0, 0, 1, 1], [], []>} : vector<512x27xbf16>, vector<27x128xbf16>, vector<512x128xf32> -> vector<512x128xf32>
    %c0_3 = arith.constant 0 : index
    %c0_4 = arith.constant 0 : index
    %3 = vector.load %arg3[%c0_3, %c0_4] : memref<1x128xf32, #tpu.memory_space<vmem>>, vector<1x128xf32>
    %4 = vector.broadcast %3 : vector<1x128xf32> to vector<512x128xf32>
    %5 = arith.addf %2, %4 : vector<512x128xf32>
    %cst_5 = arith.constant 0.000000e+00 : f32
    %6 = vector.broadcast %cst_5 : f32 to vector<512x128xf32>
    %7 = arith.maximumf %5, %6 : vector<512x128xf32>
    %c0_6 = arith.constant 0 : index
    %c0_7 = arith.constant 0 : index
    %8 = vector.load %arg1[%c0_6, %c0_7] : memref<2x512xbf16, #tpu.memory_space<vmem>>, vector<2x512xbf16>
    %9 = arith.truncf %7 : vector<512x128xf32> to vector<512x128xbf16>
    %cst_8 = arith.constant dense<0.000000e+00> : vector<2x128xf32>
    %10 = tpu.matmul %8, %9, %cst_8 {dimension_numbers = #tpu.dot_dimension_numbers<[1], [0], [0], [1], [0, 0, 1, 1], [], []>} : vector<2x512xbf16>, vector<512x128xbf16>, vector<2x128xf32> -> vector<2x128xf32>
    %11 = arith.truncf %10 : vector<2x128xf32> to vector<2x128xbf16>
    %c0_9 = arith.constant 0 : index
    %c0_10 = arith.constant 0 : index
    %12 = vector.load %arg4[%c0_9, %c0_10] : memref<128x128xbf16, #tpu.memory_space<vmem>>, vector<128x128xbf16>
    %cst_11 = arith.constant dense<0.000000e+00> : vector<2x128xf32>
    %13 = tpu.matmul %11, %12, %cst_11 {dimension_numbers = #tpu.dot_dimension_numbers<[1], [0], [0], [1], [0, 0, 1, 1], [], []>} : vector<2x128xbf16>, vector<128x128xbf16>, vector<2x128xf32> -> vector<2x128xf32>
    %c0_12 = arith.constant 0 : index
    %c0_13 = arith.constant 0 : index
    %14 = vector.load %arg5[%c0_12, %c0_13] : memref<1x128xf32, #tpu.memory_space<vmem>>, vector<1x128xf32>
    %15 = vector.broadcast %14 : vector<1x128xf32> to vector<2x128xf32>
    %16 = arith.addf %13, %15 : vector<2x128xf32>
    %cst_14 = arith.constant 0.000000e+00 : f32
    %17 = vector.broadcast %cst_14 : f32 to vector<2x128xf32>
    %18 = arith.maximumf %16, %17 : vector<2x128xf32>
    %19 = arith.truncf %18 : vector<2x128xf32> to vector<2x128xbf16>
    %c0_15 = arith.constant 0 : index
    %c0_16 = arith.constant 0 : index
    %20 = vector.load %arg6[%c0_15, %c0_16] : memref<128x1024xbf16, #tpu.memory_space<vmem>>, vector<128x1024xbf16>
    %cst_17 = arith.constant dense<0.000000e+00> : vector<2x1024xf32>
    %21 = tpu.matmul %19, %20, %cst_17 {dimension_numbers = #tpu.dot_dimension_numbers<[1], [0], [0], [1], [0, 0, 1, 1], [], []>} : vector<2x128xbf16>, vector<128x1024xbf16>, vector<2x1024xf32> -> vector<2x1024xf32>
    %c0_18 = arith.constant 0 : index
    %c0_19 = arith.constant 0 : index
    %22 = vector.load %arg7[%c0_18, %c0_19] : memref<1x1024xf32, #tpu.memory_space<vmem>>, vector<1x1024xf32>
    %23 = vector.broadcast %22 : vector<1x1024xf32> to vector<2x1024xf32>
    %24 = arith.addf %21, %23 : vector<2x1024xf32>
    %cst_20 = arith.constant 0.000000e+00 : f32
    %25 = vector.broadcast %cst_20 : f32 to vector<2x1024xf32>
    %26 = arith.maximumf %24, %25 : vector<2x1024xf32>
    %27 = arith.truncf %26 : vector<2x1024xf32> to vector<2x1024xbf16>
    %c0_21 = arith.constant 0 : index
    %c0_22 = arith.constant 0 : index
    %28 = vector.load %arg8[%c0_21, %c0_22] : memref<1024x128xbf16, #tpu.memory_space<vmem>>, vector<1024x128xbf16>
    %cst_23 = arith.constant dense<0.000000e+00> : vector<2x128xf32>
    %29 = tpu.matmul %27, %28, %cst_23 {dimension_numbers = #tpu.dot_dimension_numbers<[1], [0], [0], [1], [0, 0, 1, 1], [], []>} : vector<2x1024xbf16>, vector<1024x128xbf16>, vector<2x128xf32> -> vector<2x128xf32>
    %c0_24 = arith.constant 0 : index
    %c0_25 = arith.constant 0 : index
    %30 = vector.load %arg9[%c0_24, %c0_25] : memref<1x128xf32, #tpu.memory_space<vmem>>, vector<1x128xf32>
    %31 = vector.broadcast %30 : vector<1x128xf32> to vector<2x128xf32>
    %32 = arith.addf %29, %31 : vector<2x128xf32>
    %c0_26 = arith.constant 0 : index
    %c0_27 = arith.constant 0 : index
    %33 = vector.load %arg10[%c0_26, %c0_27] : memref<2x128xf32, #tpu.memory_space<vmem>>, vector<2x128xf32>
    tpu.vector_store %arg10[%c0_26, %c0_27], %32 {strides = array<i32>} : memref<2x128xf32, #tpu.memory_space<vmem>>, vector<2x128xf32>,
    return
  }
}

</mosaic_0001>

<bundles_post_ra>
// kernel: tlib_classifier_mdd_forward.1
= control target key start
LH: loop header
LB: loop body
LE: loop exit
PB: predicated region body
PF: predicated region fallthrough
CT: control target
= control target key end

     0   :  { %vm380_vm0 = vcmask 1044480   ;;  %vm381_vm1 = vcmask 1045504   ;;  %v2901_v2 = vmov 65535   ;;  %vm283_vm2 = vcmask 220160   ;;  %s3682_s0 = inlined_call_operand.vmem [shape: bf16[512,27], index: 0, kind: input, shape index: {}]   ;;  %s3683_s1 = inlined_call_operand.vmem [shape: bf16[2,512], index: 1, kind: input, shape index: {}]   ;;  %s3684_s2 = inlined_call_operand.vmem [shape: bf16[27,128], index: 2, kind: input, shape index: {}]   ;;  %s3685_s3 = inlined_call_operand.vmem [shape: f32[1,128], index: 3, kind: input, shape index: {}]   ;;  %s3686_s4 = inlined_call_operand.vmem [shape: bf16[128,128], index: 4, kind: input, shape index: {}]   ;;  %s3687_s5 = inlined_call_operand.vmem [shape: f32[1,128], index: 5, kind: input, shape index: {}]   ;;  %s3688_s6 = inlined_call_operand.vmem [shape: bf16[128,1024], index: 6, kind: input, shape index: {}]   ;;  %s3689_s7 = inlined_call_operand.vmem [shape: f32[1,1024], index: 7, kind: input, shape index: {}]   ;;  %s3690_s8 = inlined_call_operand.vmem [shape: bf16[1024,128], index: 8, kind: input, shape index: {}]   ;;  %s3691_s9 = inlined_call_operand.vmem [shape: f32[1,128], index: 9, kind: input, shape index: {}]   ;;  %s3692_s10 = inlined_call_operand.hbm [shape: f32[2,128], index: 10, kind: output, shape index: {}]  }
   0x1   :  { %v2771_v0 = vld [vmem:[%s3684_s2] sm:$0xff]   ;;  %v2772_v1 = vld [vmem:[%s3684_s2 + $0x8] sm:$0x3f]   ;;  %v382_v3 = vsel %vm380_vm0, 4294967295, %v2901_v2  ;;  %v2775_v8 = vld [vmem:[%s3682_s0 + $0x10] sm:$0xff]  }
   0x2   :  { %2677 = vmatprep.subr.bf16.mxu0 %v2771_v0  ;;  %v2773_v4 = vld [vmem:[%s3682_s0] sm:$0xff]   ;;  %v383_v5 = vsel %vm381_vm1, %v382_v3, 0  ;;  %v2774_v7 = vld [vmem:[%s3682_s0 + $0x8] sm:$0xff]   ;;  %v2776_v9 = vld [vmem:[%s3682_s0 + $0x18] sm:$0xff]  }
   0x3   :  { %2678 = vmatpush3.bf16.msra.mxu0 %v2771_v0  ;;  %v385_v6 = vand.u32 %v2772_v1, %v383_v5  ;;  %2681 = vmatprep.mubr.msk.bf16.mxu0 %vm283_vm2, %v2773_v4  ;;  %v2777_v10 = vld [vmem:[%s3682_s0 + $0x20] sm:$0xff]   ;;  %v2778_v11 = vld [vmem:[%s3682_s0 + $0x28] sm:$0xff]   ;;  %v2779_v12 = vld [vmem:[%s3682_s0 + $0x30] sm:$0xff]  }
   0x4   :  { %v2780_v13 = vld [vmem:[%s3682_s0 + $0x38] sm:$0xff]   ;;  %v2781_v14 = vld [vmem:[%s3682_s0 + $0x40] sm:$0xff]   ;;  %v2782_v15 = vld [vmem:[%s3682_s0 + $0x48] sm:$0xff]  }
   0x5   :  { %2679 = vmatprep.subr.bf16.mxu0 %v385_v6  ;;  %v2783_v16 = vld [vmem:[%s3682_s0 + $0x50] sm:$0xff]   ;;  %v2784_v17 = vld [vmem:[%s3682_s0 + $0x58] sm:$0xff]   ;;  %v2785_v18 = vld [vmem:[%s3682_s0 + $0x60] sm:$0xff]  }
   0x6   :  { %v2786_v19 = vld [vmem:[%s3682_s0 + $0x68] sm:$0xff]   ;;  %v2787_v20 = vld [vmem:[%s3682_s0 + $0x70] sm:$0xff]   ;;  %v2788_v21 = vld [vmem:[%s3682_s0 + $0x78] sm:$0xff]  }
   0x7   :  { %2680 = vmatpush3.bf16.msra.mxu0 %v385_v6  ;;  %v2789_v22 = vld [vmem:[%s3682_s0 + $0x80] sm:$0xff]   ;;  %v2790_v23 = vld [vmem:[%s3682_s0 + $0x88] sm:$0xff]   ;;  %v2791_v24 = vld [vmem:[%s3682_s0 + $0x90] sm:$0xff]  }
   0x8   :  { %v2792_v25 = vld [vmem:[%s3682_s0 + $0x98] sm:$0xff]   ;;  %v2793_v26 = vld [vmem:[%s3682_s0 + $0xa0] sm:$0xff]  }
   0xa   :  { %2682 = vmatmul.mubr.msk.bf16.vlgmr.msra.gmra.mrb[0].mxu0 %vm283_vm2, %v2774_v7 }
   0xb   :  { %2685 = vmatprep.mubr.msk.bf16.mxu0 %vm283_vm2, %v2775_v8 }
  0x12   :  { %2686 = vmatmul.mubr.msk.bf16.gmra.mrb[4].mxu0 %vm283_vm2, %v2776_v9 }
  0x13   :  { %2689 = vmatprep.mubr.msk.bf16.mxu0 %vm283_vm2, %v2777_v10 }
  0x1a   :  { %2690 = vmatmul.mubr.msk.bf16.gmra.mrb[8].mxu0 %vm283_vm2, %v2778_v11 }
  0x1b   :  { %2693 = vmatprep.mubr.msk.bf16.mxu0 %vm283_vm2, %v2779_v12 }
  0x22   :  { %2694 = vmatmul.mubr.msk.bf16.gmra.mrb[12].mxu0 %vm283_vm2, %v2780_v13 }
  0x23   :  { %2697 = vmatprep.mubr.msk.bf16.mxu0 %vm283_vm2, %v2781_v14 }
  0x2a   :  { %2698 = vmatmul.mubr.msk.bf16.gmra.mrb[16].mxu0 %vm283_vm2, %v2782_v15 }
  0x2b   :  { %2701 = vmatprep.mubr.msk.bf16.mxu0 %vm283_vm2, %v2783_v16 }
  0x32   :  { %2702 = vmatmul.mubr.msk.bf16.gmra.mrb[20].mxu0 %vm283_vm2, %v2784_v17 }
  0x33   :  { %2705 = vmatprep.mubr.msk.bf16.mxu0 %vm283_vm2, %v2785_v18 }
  0x3a   :  { %2706 = vmatmul.mubr.msk.bf16.gmra.mrb[24].mxu0 %vm283_vm2, %v2786_v19 }
  0x3b   :  { %2709 = vmatprep.mubr.msk.bf16.mxu0 %vm283_vm2, %v2787_v20 }
  0x42   :  { %2710 = vmatmul.mubr.msk.bf16.gmra.mrb[28].mxu0 %vm283_vm2, %v2788_v21 }
  0x43   :  { %2713 = vmatprep.mubr.msk.bf16.mxu0 %vm283_vm2, %v2789_v22 }
  0x4a   :  { %2714 = vmatmul.mubr.msk.bf16.gmra.mrb[32].mxu0 %vm283_vm2, %v2790_v23 }
  0x4b   :  { %2717 = vmatprep.mubr.msk.bf16.mxu0 %vm283_vm2, %v2791_v24 }
  0x4c   :  { %15 = vsyncpa [#allocation3], 0  ;;  %v2794_v27 = vld [vmem:[%s3682_s0 + $0xa8] sm:$0xff]   ;;  %v2795_v28 = vld [vmem:[%s3682_s0 + $0xb0] sm:$0xff]   ;;  %v2902_v38 = vmov 1966171168   ;;  %v785_v40 = vlaneseq }
  0x4d   :  { %v2796_v29 = vld [vmem:[%s3682_s0 + $0xb8] sm:$0xff]   ;;  %v2797_v30 = vld [vmem:[%s3682_s0 + $0xc0] sm:$0xff]   ;;  %v2798_v31 = vld [vmem:[%s3682_s0 + $0xc8] sm:$0xff]   ;;  %v783_v39 = vunpack.c.l.s4 %v2902_v38  ;;  %vm2904_vm3 = vmmov 0  }
  0x4e   :  { %v2799_v32 = vld [vmem:[%s3682_s0 + $0xd0] sm:$0xff]   ;;  %v2800_v33 = vld [vmem:[%s3682_s0 + $0xd8] sm:$0xff]   ;;  %v2801_v34 = vld [vmem:[%s3682_s0 + $0xe0] sm:$0xff]   ;;  %v3096_v42 = vshrl.u32 %v785_v40, 7 }
  0x4f   :  { %v2802_v35 = vld [vmem:[%s3682_s0 + $0xe8] sm:$0xff]   ;;  %v2803_v36 = vld [vmem:[%s3682_s0 + $0xf0] sm:$0xff]   ;;  %v2804_v37 = vld [vmem:[%s3682_s0 + $0xf8] sm:$0xff]   ;;  %v784_v41 = vunpack.c.0.s8 %v783_v39 }
  0x50   :  { %v2363_v43 = vld.sshfl [vmem:[%s3683_s1] sm:$0x33 pattern:$0x75316420] }
  0x51   :  { %v781_v44 = vcombine.high %v2363_v43, %v2363_v43  ;;  %v787_v45 = vsub.s32 %v784_v41, %v3096_v42  ;;  %v3110_v48 = vld [vmem:[%s3685_s3] ss:$0 sm:$0xff] }
  0x52   :  { %2718 = vmatmul.mubr.msk.bf16.gmra.mrb[36].mxu0 %vm283_vm2, %v2792_v25 }
  0x53   :  { %2721 = vmatprep.mubr.msk.bf16.mxu0 %vm283_vm2, %v2793_v26  ;;  %v3102_v46 = vrot.slane %v781_v44, %v787_v45  ;;  %v3104_v47 = vrot.slane %v2363_v43, %v787_v45 }
  0x55   :  { %834 = vmatprep.mubr.bf16.mxu1 %v3102_v46 }
  0x5a   :  { %2722 = vmatmul.mubr.msk.bf16.gmra.mrb[40].mxu0 %vm283_vm2, %v2794_v27 }
  0x5b   :  { %2725 = vmatprep.mubr.msk.bf16.mxu0 %vm283_vm2, %v2795_v28 }
  0x62   :  { %2726 = vmatmul.mubr.msk.bf16.gmra.mrb[44].mxu0 %vm283_vm2, %v2796_v29 }
  0x63   :  { %2729 = vmatprep.mubr.msk.bf16.mxu0 %vm283_vm2, %v2797_v30 }
  0x6a   :  { %2730 = vmatmul.mubr.msk.bf16.gmra.mrb[48].mxu0 %vm283_vm2, %v2798_v31 }
  0x6b   :  { %2733 = vmatprep.mubr.msk.bf16.mxu0 %vm283_vm2, %v2799_v32 }
  0x72   :  { %2734 = vmatmul.mubr.msk.bf16.gmra.mrb[52].mxu0 %vm283_vm2, %v2800_v33 }
  0x73   :  { %2737 = vmatprep.mubr.msk.bf16.mxu0 %vm283_vm2, %v2801_v34 }
  0x7a   :  { %2738 = vmatmul.mubr.msk.bf16.gmra.mrb[56].mxu0 %vm283_vm2, %v2802_v35 }
  0x7b   :  { %2741 = vmatprep.mubr.msk.bf16.mxu0 %vm283_vm2, %v2803_v36 }
  0x82   :  { %2742 = vmatmul.mubr.msk.bf16.gmra.mrb[60].mxu0 %vm283_vm2, %v2804_v37 }
  0xdd   :  { %v2683_v49 = vpop.f32.mrb[0].mxu0 }
  0xde   :  { %v430_v50 = vadd.f32 %v2683_v49, %v3110_v48  ;;  %v421_v51 = vpop.f32.mrb[1].mxu0 }
  0xdf   :  { %v422_v52 = vadd.f32 %v3110_v48, %v421_v51  ;;  %v2684_v53 = vpop.f32.mrb[2].mxu0 }
  0xe0   :  { %v433_v54 = vadd.f32 %v2684_v53, %v3110_v48  ;;  %v424_v55 = vpop.f32.mrb[3].mxu0  ;;  %v678_v57 = vmax.f32 %v430_v50, 0.0 }
  0xe1   :  { %v425_v56 = vadd.f32 %v3110_v48, %v424_v55  ;;  %v676_v59 = vmax.f32 %v422_v52, 0.0 }
  0xe2   :  { %v679_v58 = vmax.f32 %v433_v54, 0.0 }
  0xe3   :  { %v677_v60 = vmax.f32 %v425_v56, 0.0 }
  0xe4   :  { %v3116_v61 = vpack.c.bf16 %v679_v58, %v678_v57 }
  0xe5   :  { %v2687_v62 = vpop.f32.mrb[4].mxu0  ;;  %v3118_v63 = vpack.c.bf16 %v677_v60, %v676_v59 }
  0xe6   :  { %v446_v0 = vadd.f32 %v2687_v62, %v3110_v48  ;;  %v437_v1 = vpop.f32.mrb[5].mxu0 }
  0xe7   :  { %v438_v2 = vadd.f32 %v3110_v48, %v437_v1  ;;  %v2688_v3 = vpop.f32.mrb[6].mxu0 }
  0xe8   :  { %v449_v4 = vadd.f32 %v2688_v3, %v3110_v48  ;;  %v440_v5 = vpop.f32.mrb[7].mxu0  ;;  %v682_v7 = vmax.f32 %v446_v0, 0.0 }
  0xe9   :  { %v441_v6 = vadd.f32 %v3110_v48, %v440_v5  ;;  %v680_v9 = vmax.f32 %v438_v2, 0.0 }
  0xea   :  { %v683_v8 = vmax.f32 %v449_v4, 0.0 }
  0xeb   :  { %v681_v10 = vmax.f32 %v441_v6, 0.0 }
  0xec   :  { %v3124_v11 = vpack.c.bf16 %v683_v8, %v682_v7 }
  0xed   :  { %v3126_v12 = vpack.c.bf16 %v681_v10, %v680_v9  ;;  %v2691_v13 = vpop.f32.mrb[8].mxu0 }
  0xee   :  { %v462_v14 = vadd.f32 %v2691_v13, %v3110_v48  ;;  %v453_v15 = vpop.f32.mrb[9].mxu0 }
  0xef   :  { %v454_v16 = vadd.f32 %v3110_v48, %v453_v15  ;;  %v2692_v17 = vpop.f32.mrb[10].mxu0 }
  0xf0   :  { %v465_v18 = vadd.f32 %v2692_v17, %v3110_v48  ;;  %v456_v19 = vpop.f32.mrb[11].mxu0  ;;  %v686_v21 = vmax.f32 %v462_v14, 0.0 }
  0xf1   :  { %v457_v20 = vadd.f32 %v3110_v48, %v456_v19  ;;  %v684_v23 = vmax.f32 %v454_v16, 0.0 }
  0xf2   :  { %v687_v22 = vmax.f32 %v465_v18, 0.0 }
  0xf3   :  { %v685_v24 = vmax.f32 %v457_v20, 0.0 }
  0xf4   :  { %v3132_v25 = vpack.c.bf16 %v687_v22, %v686_v21 }
  0xf5   :  { %v3134_v26 = vpack.c.bf16 %v685_v24, %v684_v23  ;;  %v2695_v27 = vpop.f32.mrb[12].mxu0 }
  0xf6   :  { %v478_v28 = vadd.f32 %v2695_v27, %v3110_v48  ;;  %v469_v29 = vpop.f32.mrb[13].mxu0 }
  0xf7   :  { %v470_v30 = vadd.f32 %v3110_v48, %v469_v29  ;;  %v2696_v31 = vpop.f32.mrb[14].mxu0 }
  0xf8   :  { %v481_v32 = vadd.f32 %v2696_v31, %v3110_v48  ;;  %v472_v33 = vpop.f32.mrb[15].mxu0  ;;  %v690_v35 = vmax.f32 %v478_v28, 0.0 }
  0xf9   :  { %v473_v34 = vadd.f32 %v3110_v48, %v472_v33  ;;  %v688_v37 = vmax.f32 %v470_v30, 0.0 }
  0xfa   :  { %v691_v36 = vmax.f32 %v481_v32, 0.0 }
  0xfb   :  { %v689_v38 = vmax.f32 %v473_v34, 0.0 }
  0xfc   :  { %v3140_v39 = vpack.c.bf16 %v691_v36, %v690_v35 }
  0xfd   :  { %v3142_v40 = vpack.c.bf16 %v689_v38, %v688_v37  ;;  %v2699_v41 = vpop.f32.mrb[16].mxu0 }
  0xfe   :  { %v494_v43 = vadd.f32 %v2699_v41, %v3110_v48  ;;  %v485_v44 = vpop.f32.mrb[17].mxu0 }
  0xff   :  { %v486_v45 = vadd.f32 %v3110_v48, %v485_v44  ;;  %v2700_v49 = vpop.f32.mrb[18].mxu0 }
 0x100   :  { %v497_v50 = vadd.f32 %v2700_v49, %v3110_v48  ;;  %v488_v51 = vpop.f32.mrb[19].mxu0  ;;  %v694_v53 = vmax.f32 %v494_v43, 0.0 }
 0x101   :  { %v489_v52 = vadd.f32 %v3110_v48, %v488_v51  ;;  %v692_v55 = vmax.f32 %v486_v45, 0.0 }
 0x102   :  { %v695_v54 = vmax.f32 %v497_v50, 0.0 }
 0x103   :  { %v693_v56 = vmax.f32 %v489_v52, 0.0 }
 0x104   :  { %v750_v57 = vpack.c.bf16 %v695_v54, %v694_v53 }
 0x105   :  { %v2703_v58 = vpop.f32.mrb[20].mxu0  ;;  %v749_v59 = vpack.c.bf16 %v693_v56, %v692_v55  ;;  %v797_v56 = vcombine.high %v3102_v46, %v3102_v46 }
 0x106   :  { %v510_v60 = vadd.f32 %v2703_v58, %v3110_v48  ;;  %v501_v62 = vpop.f32.mrb[21].mxu0 }
 0x107   :  { %v502_v0 = vadd.f32 %v3110_v48, %v501_v62  ;;  %v2704_v1 = vpop.f32.mrb[22].mxu0  ;;  %2536 = vmatprep.subr.bf16.mxu1 %v749_v59 }
 0x108   :  { %v513_v2 = vadd.f32 %v2704_v1, %v3110_v48  ;;  %v504_v3 = vpop.f32.mrb[23].mxu0  ;;  %2537 = vmatpush3.bf16.msra.mxu1 %v3118_v63  ;;  %v698_v5 = vmax.f32 %v510_v60, 0.0 }
 0x109   :  { %v505_v4 = vadd.f32 %v3110_v48, %v504_v3  ;;  %2538 = vmatprep.subr.bf16.mxu1 %v750_v57  ;;  %v696_v7 = vmax.f32 %v502_v0, 0.0 }
 0x10a   :  { %v699_v6 = vmax.f32 %v513_v2, 0.0 }
 0x10b   :  { %v697_v8 = vmax.f32 %v505_v4, 0.0 }
 0x10c   :  { %v752_v9 = vpack.c.bf16 %v699_v6, %v698_v5  ;;  %2539 = vmatpush3.bf16.msra.mxu1 %v3116_v61 }
 0x10d   :  { %v751_v10 = vpack.c.bf16 %v697_v8, %v696_v7  ;;  %v2707_v13 = vpop.f32.mrb[24].mxu0 }
 0x10e   :  { %v526_v14 = vadd.f32 %v2707_v13, %v3110_v48  ;;  %v517_v15 = vpop.f32.mrb[25].mxu0 }
 0x10f   :  { %v518_v16 = vadd.f32 %v3110_v48, %v517_v15  ;;  %v2708_v17 = vpop.f32.mrb[26].mxu0  ;;  %2540 = vmatprep.subr.bf16.mxu1 %v751_v10 }
 0x110   :  { %v529_v63 = vadd.f32 %v2708_v17, %v3110_v48  ;;  %v520_v18 = vpop.f32.mrb[27].mxu0  ;;  %2541 = vmatpush3.bf16.msra.mxu1 %v3126_v12  ;;  %v702_v20 = vmax.f32 %v526_v14, 0.0 }
 0x111   :  { %v521_v19 = vadd.f32 %v3110_v48, %v520_v18  ;;  %2542 = vmatprep.subr.bf16.mxu1 %v752_v9  ;;  %v700_v61 = vmax.f32 %v518_v16, 0.0 }
 0x112   :  { %v703_v21 = vmax.f32 %v529_v63, 0.0 }
 0x113   :  { %v701_v22 = vmax.f32 %v521_v19, 0.0 }
 0x114   :  { %v754_v23 = vpack.c.bf16 %v703_v21, %v702_v20  ;;  %2543 = vmatpush3.bf16.msra.mxu1 %v3124_v11 }
 0x115   :  { %v753_v24 = vpack.c.bf16 %v701_v22, %v700_v61  ;;  %v2711_v27 = vpop.f32.mrb[28].mxu0 }
 0x116   :  { %v542_v28 = vadd.f32 %v2711_v27, %v3110_v48  ;;  %v533_v29 = vpop.f32.mrb[29].mxu0 }
 0x117   :  { %v534_v30 = vadd.f32 %v3110_v48, %v533_v29  ;;  %v2712_v31 = vpop.f32.mrb[30].mxu0  ;;  %2544 = vmatprep.subr.bf16.mxu1 %v753_v24 }
 0x118   :  { %v545_v12 = vadd.f32 %v2712_v31, %v3110_v48  ;;  %v536_v32 = vpop.f32.mrb[31].mxu0  ;;  %2545 = vmatpush3.bf16.msra.mxu1 %v3134_v26  ;;  %v706_v34 = vmax.f32 %v542_v28, 0.0 }
 0x119   :  { %v537_v33 = vadd.f32 %v3110_v48, %v536_v32  ;;  %2546 = vmatprep.subr.bf16.mxu1 %v754_v23  ;;  %v704_v11 = vmax.f32 %v534_v30, 0.0 }
 0x11a   :  { %v707_v35 = vmax.f32 %v545_v12, 0.0 }
 0x11b   :  { %v705_v36 = vmax.f32 %v537_v33, 0.0 }
 0x11c   :  { %v756_v37 = vpack.c.bf16 %v707_v35, %v706_v34  ;;  %2547 = vmatpush3.bf16.msra.mxu1 %v3132_v25 }
 0x11d   :  { %v755_v38 = vpack.c.bf16 %v705_v36, %v704_v11  ;;  %v2715_v41 = vpop.f32.mrb[32].mxu0 }
 0x11e   :  { %v558_v43 = vadd.f32 %v2715_v41, %v3110_v48  ;;  %v549_v44 = vpop.f32.mrb[33].mxu0 }
 0x11f   :  { %v550_v45 = vadd.f32 %v3110_v48, %v549_v44  ;;  %v2716_v49 = vpop.f32.mrb[34].mxu0  ;;  %2548 = vmatprep.subr.bf16.mxu1 %v755_v38 }
 0x120   :  { %v561_v26 = vadd.f32 %v2716_v49, %v3110_v48  ;;  %v552_v50 = vpop.f32.mrb[35].mxu0  ;;  %2549 = vmatpush3.bf16.msra.mxu1 %v3142_v40  ;;  %v710_v52 = vmax.f32 %v558_v43, 0.0 }
 0x121   :  { %v553_v51 = vadd.f32 %v3110_v48, %v552_v50  ;;  %2550 = vmatprep.subr.bf16.mxu1 %v756_v37  ;;  %v708_v25 = vmax.f32 %v550_v45, 0.0 }
 0x122   :  { %v711_v53 = vmax.f32 %v561_v26, 0.0 }
 0x123   :  { %v709_v54 = vmax.f32 %v553_v51, 0.0 }
 0x124   :  { %v3171_v55 = vpack.c.bf16 %v711_v53, %v710_v52  ;;  %2551 = vmatpush3.bf16.msra.mxu1 %v3140_v39 }
 0x125   :  { %v3176_v57 = vpack.c.bf16 %v709_v54, %v708_v25  ;;  %v2719_v58 = vpop.f32.mrb[36].mxu0 }
 0x126   :  { %v574_v59 = vadd.f32 %v2719_v58, %v3110_v48  ;;  %v565_v40 = vpop.f32.mrb[37].mxu0 }
 0x127   :  { %v566_v60 = vadd.f32 %v3110_v48, %v565_v40  ;;  %v2720_v62 = vpop.f32.mrb[38].mxu0  ;;  %835 = vmatmul.mubr.bf16.vlgmr.msra.gmra.mrb[0].mxu1 %v3104_v47 }
 0x128   :  { %v577_v0 = vadd.f32 %v2720_v62, %v3110_v48  ;;  %v568_v1 = vpop.f32.mrb[39].mxu0  ;;  %874 = vmatprep.mubr.bf16.mxu1 %v797_v56  ;;  %v714_v2 = vmax.f32 %v574_v59, 0.0 }
 0x129   :  { %v569_v39 = vadd.f32 %v3110_v48, %v568_v1  ;;  %v712_v46 = vmax.f32 %v566_v60, 0.0 }
 0x12a   :  { %v715_v3 = vmax.f32 %v577_v0, 0.0 }
 0x12b   :  { %v713_v4 = vmax.f32 %v569_v39, 0.0 }
 0x12c   :  { %v3183_v5 = vpack.c.bf16 %v715_v3, %v714_v2 }
 0x12d   :  { %v3185_v6 = vpack.c.bf16 %v713_v4, %v712_v46  ;;  %v2723_v7 = vpop.f32.mrb[40].mxu0 }
 0x12e   :  { %v590_v8 = vadd.f32 %v2723_v7, %v3110_v48  ;;  %v581_v9 = vpop.f32.mrb[41].mxu0 }
 0x12f   :  { %v582_v10 = vadd.f32 %v3110_v48, %v581_v9  ;;  %v2724_v13 = vpop.f32.mrb[42].mxu0 }
 0x130   :  { %v593_v14 = vadd.f32 %v2724_v13, %v3110_v48  ;;  %v584_v15 = vpop.f32.mrb[43].mxu0  ;;  %v718_v17 = vmax.f32 %v590_v8, 0.0 }
 0x131   :  { %v585_v16 = vadd.f32 %v3110_v48, %v584_v15  ;;  %v716_v18 = vmax.f32 %v582_v10, 0.0 }
 0x132   :  { %v719_v63 = vmax.f32 %v593_v14, 0.0 }
 0x133   :  { %v717_v19 = vmax.f32 %v585_v16, 0.0 }
 0x134   :  { %v3191_v20 = vpack.c.bf16 %v719_v63, %v718_v17 }
 0x135   :  { %v3193_v21 = vpack.c.bf16 %v717_v19, %v716_v18  ;;  %v2727_v61 = vpop.f32.mrb[44].mxu0 }
 0x136   :  { %v606_v22 = vadd.f32 %v2727_v61, %v3110_v48  ;;  %v597_v23 = vpop.f32.mrb[45].mxu0 }
 0x137   :  { %v598_v24 = vadd.f32 %v3110_v48, %v597_v23  ;;  %v2728_v27 = vpop.f32.mrb[46].mxu0 }
 0x138   :  { %v609_v28 = vadd.f32 %v2728_v27, %v3110_v48  ;;  %v600_v29 = vpop.f32.mrb[47].mxu0  ;;  %v722_v31 = vmax.f32 %v606_v22, 0.0 }
 0x139   :  { %v601_v30 = vadd.f32 %v3110_v48, %v600_v29  ;;  %v720_v32 = vmax.f32 %v598_v24, 0.0 }
 0x13a   :  { %v723_v12 = vmax.f32 %v609_v28, 0.0 }
 0x13b   :  { %v721_v33 = vmax.f32 %v601_v30, 0.0 }
 0x13c   :  { %v3199_v34 = vpack.c.bf16 %v723_v12, %v722_v31 }
 0x13d   :  { %v3201_v35 = vpack.c.bf16 %v721_v33, %v720_v32  ;;  %v2731_v11 = vpop.f32.mrb[48].mxu0  ;;  %v796_v33 = vcombine.high %v3104_v47, %v3104_v47  ;;  %v2807_v47 = vld [vmem:[%s3686_s4 + $0x10] sm:$0xff]  }
 0x13e   :  { %v622_v36 = vadd.f32 %v2731_v11, %v3110_v48  ;;  %v613_v37 = vpop.f32.mrb[49].mxu0  ;;  %v2810_v11 = vld [vmem:[%s3686_s4 + $0x28] sm:$0xff]  }
 0x13f   :  { %v614_v38 = vadd.f32 %v3110_v48, %v613_v37  ;;  %v2732_v41 = vpop.f32.mrb[50].mxu0  ;;  %v2812_v37 = vld [vmem:[%s3686_s4 + $0x38] sm:$0xff]  }
 0x140   :  { %v625_v43 = vadd.f32 %v2732_v41, %v3110_v48  ;;  %v616_v44 = vpop.f32.mrb[51].mxu0  ;;  %v726_v49 = vmax.f32 %v622_v36, 0.0  ;;  %v2811_v36 = vld [vmem:[%s3686_s4 + $0x30] sm:$0xff]   ;;  %v1001_v41 = vld [vmem:[%s3688_s6 + $0x28] sm:$0xff] }
 0x141   :  { %v617_v45 = vadd.f32 %v3110_v48, %v616_v44  ;;  %v724_v50 = vmax.f32 %v614_v38, 0.0  ;;  %v997_v38 = vld [vmem:[%s3688_s6 + $0x8] sm:$0xff] }
 0x142   :  { %v727_v26 = vmax.f32 %v625_v43, 0.0  ;;  %v1005_v43 = vld [vmem:[%s3688_s6 + $0x48] sm:$0xff]  ;;  %v2375_v44 = vcombine.low %v997_v38, %v1001_v41 }
 0x143   :  { %v725_v51 = vmax.f32 %v617_v45, 0.0  ;;  %v2376_v45 = vcombine.high %v997_v38, %v1001_v41  ;;  %v1036_v38 = vld [vmem:[%s3688_s6 + $0x140] sm:$0xff] }
 0x144   :  { %v766_v52 = vpack.c.bf16 %v727_v26, %v726_v49  ;;  %v1009_v49 = vld [vmem:[%s3688_s6 + $0x68] sm:$0xff]  ;;  %v1040_v41 = vld [vmem:[%s3688_s6 + $0x160] sm:$0xff] }
 0x145   :  { %v765_v53 = vpack.c.bf16 %v725_v51, %v724_v50  ;;  %v2735_v25 = vpop.f32.mrb[52].mxu0  ;;  %v2384_v26 = vcombine.high %v1005_v43, %v1009_v49  ;;  %v1013_v50 = vld [vmem:[%s3688_s6 + $0x88] sm:$0xff]  ;;  %1463 = vmatprep.subr.bf16.mxu0 %v2376_v45  ;;  %v1044_v45 = vld [vmem:[%s3688_s6 + $0x180] sm:$0xff] }
 0x146   :  { %v638_v54 = vadd.f32 %v2735_v25, %v3110_v48  ;;  %v629_v56 = vpop.f32.mrb[53].mxu0  ;;  %v1017_v51 = vld [vmem:[%s3688_s6 + $0xa8] sm:$0xff]  ;;  %1464 = vmatpush1.bf16.msra.mxu0 %v2375_v44  ;;  %v1000_v25 = vld [vmem:[%s3688_s6 + $0x20] sm:$0xff]  ;;  %v2414_v44 = vcombine.high %v1036_v38, %v1040_v41 }
 0x147   :  { %v630_v58 = vadd.f32 %v3110_v48, %v629_v56  ;;  %v2736_v59 = vpop.f32.mrb[54].mxu0  ;;  %2558 = vmatprep.subr.bf16.mxu1 %v765_v53  ;;  %v996_v53 = vld [vmem:[%s3688_s6] sm:$0xff]  ;;  %1465 = vmatprep.subr.bf16.mxu0 %v2384_v26  ;;  %v2413_v26 = vcombine.low %v1036_v38, %v1040_v41  ;;  %v1043_v38 = vld [vmem:[%s3688_s6 + $0x178] sm:$0xff] }
 0x148   :  { %v641_v40 = vadd.f32 %v2736_v59, %v3110_v48  ;;  %v632_v60 = vpop.f32.mrb[55].mxu0  ;;  %2559 = vmatpush3.bf16.msra.mxu1 %v3176_v57  ;;  %v730_v0 = vmax.f32 %v638_v54, 0.0  ;;  %v2392_v54 = vcombine.high %v1013_v50, %v1017_v51  ;;  %v2373_v56 = vcombine.low %v996_v53, %v1000_v25  ;;  %v1021_v59 = vld [vmem:[%s3688_s6 + $0xc8] sm:$0xff] }
 0x149   :  { %v633_v62 = vadd.f32 %v3110_v48, %v632_v60  ;;  %2560 = vmatprep.subr.bf16.mxu1 %v766_v52  ;;  %v728_v39 = vmax.f32 %v630_v58, 0.0  ;;  %v2383_v52 = vcombine.low %v1005_v43, %v1009_v49  ;;  %v2374_v58 = vcombine.high %v996_v53, %v1000_v25  ;;  %v1048_v49 = vld [vmem:[%s3688_s6 + $0x1a0] sm:$0xff] }
 0x14a   :  { %v731_v1 = vmax.f32 %v641_v40, 0.0  ;;  %v1025_v40 = vld [vmem:[%s3688_s6 + $0xe8] sm:$0xff]  ;;  %v2391_v60 = vcombine.low %v1013_v50, %v1017_v51  ;;  %v2422_v50 = vcombine.high %v1044_v45, %v1048_v49  ;;  %v2421_v51 = vcombine.low %v1044_v45, %v1048_v49  ;;  %v1056_v53 = vld [vmem:[%s3688_s6 + $0x1e0] sm:$0xff]  ;;  %v1046_v49 = vld [vmem:[%s3688_s6 + $0x190] sm:$0xff] }
 0x14b   :  { %v729_v2 = vmax.f32 %v633_v62, 0.0  ;;  %1466 = vmatpush1.bf16.msra.mxu0 %v2383_v52  ;;  %v2400_v62 = vcombine.high %v1021_v59, %v1025_v40  ;;  %v1052_v52 = vld [vmem:[%s3688_s6 + $0x1c0] sm:$0xff] }
 0x14c   :  { %v768_v3 = vpack.c.bf16 %v731_v1, %v730_v0  ;;  %2561 = vmatpush3.bf16.msra.mxu1 %v3171_v55  ;;  %1467 = vmatprep.subr.bf16.mxu0 %v2392_v54  ;;  %v1029_v0 = vld [vmem:[%s3688_s6 + $0x108] sm:$0xff]  ;;  %v2430_v25 = vcombine.high %v1052_v52, %v1056_v53  ;;  %v2429_v54 = vcombine.low %v1052_v52, %v1056_v53 }
 0x14d   :  { %v767_v46 = vpack.c.bf16 %v729_v2, %v728_v39  ;;  %v2739_v4 = vpop.f32.mrb[56].mxu0  ;;  %v1033_v1 = vld [vmem:[%s3688_s6 + $0x128] sm:$0xff]  ;;  %v2399_v39 = vcombine.low %v1021_v59, %v1025_v40  ;;  %v999_v59 = vld [vmem:[%s3688_s6 + $0x18] sm:$0xff] }
 0x14e   :  { %v654_v7 = vadd.f32 %v2739_v4, %v3110_v48  ;;  %v645_v8 = vpop.f32.mrb[57].mxu0  ;;  %v2408_v2 = vcombine.high %v1029_v0, %v1033_v1  ;;  %v2407_v4 = vcombine.low %v1029_v0, %v1033_v1 }
 0x14f   :  { %v646_v9 = vadd.f32 %v3110_v48, %v645_v8  ;;  %v2740_v10 = vpop.f32.mrb[58].mxu0  ;;  %2562 = vmatprep.subr.bf16.mxu1 %v767_v46  ;;  %1468 = vmatpush1.bf16.msra.mxu0 %v2391_v60  ;;  %v1041_v46 = vld [vmem:[%s3688_s6 + $0x168] sm:$0xff]  ;;  %v1003_v60 = vld [vmem:[%s3688_s6 + $0x38] sm:$0xff] }
 0x150   :  { %v657_v57 = vadd.f32 %v2740_v10, %v3110_v48  ;;  %v648_v13 = vpop.f32.mrb[59].mxu0  ;;  %2563 = vmatpush3.bf16.msra.mxu1 %v3185_v6  ;;  %v734_v15 = vmax.f32 %v654_v7, 0.0  ;;  %1469 = vmatprep.subr.bf16.mxu0 %v2400_v62  ;;  %v1045_v8 = vld [vmem:[%s3688_s6 + $0x188] sm:$0xff]  ;;  %v2379_v0 = vcombine.low %v999_v59, %v1003_v60  ;;  %v2380_v1 = vcombine.high %v999_v59, %v1003_v60  ;;  %v1055_v59 = vld [vmem:[%s3688_s6 + $0x1d8] sm:$0xff] }
 0x151   :  { %v649_v14 = vadd.f32 %v3110_v48, %v648_v13  ;;  %2564 = vmatprep.subr.bf16.mxu1 %v768_v3  ;;  %v732_v55 = vmax.f32 %v646_v9, 0.0  ;;  %v1037_v3 = vld [vmem:[%s3688_s6 + $0x148] sm:$0xff] }
 0x152   :  { %v735_v16 = vmax.f32 %v657_v57, 0.0  ;;  %v2416_v7 = vcombine.high %v1037_v3, %v1041_v46  ;;  %v1049_v9 = vld [vmem:[%s3688_s6 + $0x1a8] sm:$0xff]  ;;  %v2415_v10 = vcombine.low %v1037_v3, %v1041_v46 }
 0x153   :  { %v733_v17 = vmax.f32 %v649_v14, 0.0  ;;  %1470 = vmatpush1.bf16.msra.mxu0 %v2399_v39  ;;  %v2424_v57 = vcombine.high %v1045_v8, %v1049_v9  ;;  %v1053_v13 = vld [vmem:[%s3688_s6 + $0x1c8] sm:$0xff]  ;;  %v2905_v39 = vmov 0  }
 0x154   :  { %v770_v63 = vpack.c.bf16 %v735_v16, %v734_v15  ;;  %2565 = vmatpush3.bf16.msra.mxu1 %v3183_v5  ;;  %1471 = vmatprep.subr.bf16.mxu0 %v2408_v2  ;;  %v1057_v14 = vld [vmem:[%s3688_s6 + $0x1e8] sm:$0xff]  ;;  %v2423_v15 = vcombine.low %v1045_v8, %v1049_v9  ;;  %v2364_v2 = vld [vmem:[%s3687_s5] ss:$0 sm:$0xff]  ;;  %v1010_v9 = vld [vmem:[%s3688_s6 + $0x70] sm:$0xff] }
 0x155   :  { %v769_v18 = vpack.c.bf16 %v733_v17, %v732_v55  ;;  %v2743_v19 = vpop.f32.mrb[60].mxu0  ;;  %v2432_v16 = vcombine.high %v1053_v13, %v1057_v14  ;;  %v2431_v55 = vcombine.low %v1053_v13, %v1057_v14  ;;  %1495 = vmatprep.mubr.bf16.mxu0 %v2905_v39 }
 0x156   :  { %v670_v61 = vadd.f32 %v2743_v19, %v3110_v48  ;;  %v661_v22 = vpop.f32.mrb[61].mxu0 }
 0x157   :  { %v662_v23 = vadd.f32 %v3110_v48, %v661_v22  ;;  %v2744_v24 = vpop.f32.mrb[62].mxu0  ;;  %2566 = vmatprep.subr.bf16.mxu1 %v769_v18  ;;  %1472 = vmatpush1.bf16.msra.mxu0 %v2407_v4 }
 0x158   :  { %v673_v6 = vadd.f32 %v2744_v24, %v3110_v48  ;;  %v664_v27 = vpop.f32.mrb[63].mxu0  ;;  %2567 = vmatpush3.bf16.msra.mxu1 %v3193_v21  ;;  %v738_v29 = vmax.f32 %v670_v61, 0.0  ;;  %v2903_v21 = vmov 0.0   ;;  %1473 = vmatprep.subr.bf16.mxu0 %v2416_v7  ;;  %v1006_v7 = vld [vmem:[%s3688_s6 + $0x50] sm:$0xff] }
 0x159   :  { %v665_v28 = vadd.f32 %v3110_v48, %v664_v27  ;;  %2568 = vmatprep.subr.bf16.mxu1 %v770_v63  ;;  %v736_v5 = vmax.f32 %v662_v23, 0.0  ;;  %v2805_v48 = vld [vmem:[%s3686_s4] sm:$0xff]  }
 0x15a   :  { %v739_v30 = vmax.f32 %v673_v6, 0.0 }
 0x15b   :  { %v737_v31 = vmax.f32 %v665_v28, 0.0  ;;  %1474 = vmatpush1.bf16.msra.mxu0 %v2415_v10  ;;  %v1004_v28 = vld [vmem:[%s3688_s6 + $0x40] sm:$0xff]  ;;  %v1007_v10 = vld [vmem:[%s3688_s6 + $0x58] sm:$0xff] }
 0x15c   :  { %v772_v12 = vpack.c.bf16 %v739_v30, %v738_v29  ;;  %2569 = vmatpush3.bf16.msra.mxu1 %v3191_v20  ;;  %v2806_v20 = vld [vmem:[%s3686_s4 + $0x8] sm:$0xff]   ;;  %1475 = vmatprep.subr.bf16.mxu0 %v2424_v57  ;;  %v1008_v29 = vld [vmem:[%s3688_s6 + $0x60] sm:$0xff]  ;;  %v1011_v57 = vld [vmem:[%s3688_s6 + $0x78] sm:$0xff] }
 0x15d   :  { %v771_v32 = vpack.c.bf16 %v737_v31, %v736_v5  ;;  %v2382_v31 = vcombine.high %v1004_v28, %v1008_v29 }
 0x15f   :  { %2570 = vmatprep.subr.bf16.mxu1 %v771_v32  ;;  %1476 = vmatpush1.bf16.msra.mxu0 %v2423_v15  ;;  %v1016_v32 = vld [vmem:[%s3688_s6 + $0xa0] sm:$0xff] }
 0x160   :  { %2571 = vmatpush3.bf16.msra.mxu1 %v3201_v35  ;;  %v2809_v35 = vld [vmem:[%s3686_s4 + $0x20] sm:$0xff]   ;;  %1477 = vmatprep.subr.bf16.mxu0 %v2432_v16  ;;  %v2386_v16 = vcombine.high %v1006_v7, %v1010_v9 }
 0x161   :  { %2572 = vmatprep.subr.bf16.mxu1 %v772_v12  ;;  %v1012_v12 = vld [vmem:[%s3688_s6 + $0x80] sm:$0xff] }
 0x163   :  { %1478 = vmatpush1.bf16.msra.mxu0 %v2431_v55  ;;  %v2388_v55 = vcombine.high %v1007_v10, %v1011_v57 }
 0x164   :  { %2573 = vmatpush3.bf16.msra.mxu1 %v3199_v34  ;;  %v2808_v34 = vld [vmem:[%s3686_s4 + $0x18] sm:$0xff]   ;;  %1545 = vmatprep.subr.bf16.mxu0 %v2380_v1 }
 0x165   :  { %2745 = vmatprep.subr.bf16.mxu1 %v2903_v21 }
 0x167   :  { %875 = vmatmul.mubr.bf16.vlgmr.msra.gmra.mrb[4].mxu1 %v796_v33  ;;  %v2381_v33 = vcombine.low %v1004_v28, %v1008_v29  ;;  %v1023_v28 = vld [vmem:[%s3688_s6 + $0xd8] sm:$0xff] }
 0x168   :  { %2746 = vmatpush3.bf16.msra.mxu1 %v2805_v48  ;;  %2761 = vmatprep.mubr.msk.bf16.mxu1 %vm2904_vm3, %v2903_v21  ;;  %v2390_v48 = vcombine.high %v1012_v12, %v1016_v32  ;;  %v1027_v29 = vld [vmem:[%s3688_s6 + $0xf8] sm:$0xff] }
 0x169   :  { %2747 = vmatprep.subr.bf16.mxu1 %v2903_v21 }
 0x16c   :  { %2748 = vmatpush3.bf16.msra.mxu1 %v2806_v20  ;;  %v1024_v20 = vld [vmem:[%s3688_s6 + $0xe0] sm:$0xff] }
 0x16d   :  { %2749 = vmatprep.subr.bf16.mxu1 %v2903_v21 }
 0x170   :  { %2750 = vmatpush3.bf16.msra.mxu1 %v2807_v47  ;;  %v2389_v47 = vcombine.low %v1012_v12, %v1016_v32  ;;  %v2404_v12 = vcombine.high %v1023_v28, %v1027_v29  ;;  %v1030_v32 = vld [vmem:[%s3688_s6 + $0x110] sm:$0xff] }
 0x171   :  { %2751 = vmatprep.subr.bf16.mxu1 %v2903_v21 }
 0x174   :  { %2752 = vmatpush3.bf16.msra.mxu1 %v2808_v34 }
 0x175   :  { %2753 = vmatprep.subr.bf16.mxu1 %v2903_v21 }
 0x178   :  { %2754 = vmatpush3.bf16.msra.mxu1 %v2809_v35  ;;  %v1028_v35 = vld [vmem:[%s3688_s6 + $0x100] sm:$0xff] }
 0x179   :  { %2755 = vmatprep.subr.bf16.mxu1 %v2903_v21 }
 0x17c   :  { %2756 = vmatpush3.bf16.msra.mxu1 %v2810_v11  ;;  %v1032_v11 = vld [vmem:[%s3688_s6 + $0x120] sm:$0xff] }
 0x17d   :  { %2757 = vmatprep.subr.bf16.mxu1 %v2903_v21  ;;  %v2405_v43 = vcombine.low %v1028_v35, %v1032_v11 }
 0x180   :  { %2758 = vmatpush3.bf16.msra.mxu1 %v2811_v36 }
 0x181   :  { %2759 = vmatprep.subr.bf16.mxu1 %v2903_v21  ;;  %v1020_v21 = vld [vmem:[%s3688_s6 + $0xc0] sm:$0xff] }
 0x182   :  { %v2398_v34 = vcombine.high %v1020_v21, %v1024_v20  ;;  %v2397_v36 = vcombine.low %v1020_v21, %v1024_v20  ;;  %v1035_v21 = vld [vmem:[%s3688_s6 + $0x138] sm:$0xff] }
 0x184   :  { %2760 = vmatpush3.bf16.msra.mxu1 %v2812_v37  ;;  %v2406_v37 = vcombine.high %v1028_v35, %v1032_v11  ;;  %v1038_v11 = vld [vmem:[%s3688_s6 + $0x150] sm:$0xff] }
 0x185   :  { %1422 = vmatprep.subr.bf16.mxu1 %v2374_v58  ;;  %v1002_v58 = vld [vmem:[%s3688_s6 + $0x30] sm:$0xff] }
 0x1fa   :  { %v2552_v17 = vpop.f32.mrb[0].mxu1 }
 0x1fb   :  { %v2553_v63 = vpop.f32.mrb[1].mxu1 }
 0x1fc   :  { %v2554_v18 = vadd.f32 %v2553_v63, %v2552_v17  ;;  %v2555_v19 = vpop.f32.mrb[2].mxu1  ;;  %v1014_v17 = vld [vmem:[%s3688_s6 + $0x90] sm:$0xff] }
 0x1fd   :  { %v2556_v61 = vpop.f32.mrb[3].mxu1  ;;  %v1018_v63 = vld [vmem:[%s3688_s6 + $0xb0] sm:$0xff]  ;;  %v1019_v19 = vld [vmem:[%s3688_s6 + $0xb8] sm:$0xff] }
 0x1fe   :  { %v2385_v61 = vcombine.low %v1006_v7, %v1010_v9  ;;  %v2816_v7 = vld [vmem:[%s3690_s8 + $0x80] sm:$0xff]   ;;  %v2818_v9 = vld [vmem:[%s3690_s8 + $0xc8] sm:$0xff]  }
 0x23a   :  { %v2574_v22 = vpop.f32.mrb[4].mxu1 }
 0x23b   :  { %v2575_v23 = vpop.f32.mrb[5].mxu1 }
 0x23c   :  { %v2576_v24 = vadd.f32 %v2575_v23, %v2574_v22  ;;  %v2577_v6 = vpop.f32.mrb[6].mxu1  ;;  %v2387_v22 = vcombine.low %v1007_v10, %v1011_v57  ;;  %v2394_v23 = vcombine.high %v1014_v17, %v1018_v63  ;;  %v2819_v10 = vld [vmem:[%s3690_s8 + $0x8] sm:$0xff]  }
 0x23d   :  { %v2578_v27 = vpop.f32.mrb[7].mxu1  ;;  %v1022_v6 = vld [vmem:[%s3688_s6 + $0xd0] sm:$0xff]  ;;  %v2820_v57 = vld [vmem:[%s3690_s8 + $0x88] sm:$0xff]  }
 0x23e   :  { %v877_v30 = vadd.f32 %v2576_v24, %v2554_v18  ;;  %v1015_v18 = vld [vmem:[%s3688_s6 + $0x98] sm:$0xff]  ;;  %v1026_v27 = vld [vmem:[%s3688_s6 + $0xf0] sm:$0xff] }
 0x23f   :  { %v2396_v24 = vcombine.high %v1015_v18, %v1019_v19  ;;  %v2401_v20 = vcombine.low %v1022_v6, %v1026_v27 }
 0x240   :  { %v882_v5 = vpack.c.bf16 %v877_v30, %v877_v30  ;;  %v2393_v30 = vcombine.low %v1014_v17, %v1018_v63  ;;  %v2826_v17 = vld [vmem:[%s3690_s8 + $0xd8] sm:$0xff]  }
 0x241   :  { %v2827_v63 = vld [vmem:[%s3690_s8 + $0x18] sm:$0xff]  }
 0x242   :  { %2762 = vmatmul.mubr.bf16.vlgmr.msra.gmra.mrb[8].mxu1 %v882_v5  ;;  %v2395_v5 = vcombine.low %v1015_v18, %v1019_v19  ;;  %v2828_v18 = vld [vmem:[%s3690_s8 + $0x98] sm:$0xff]   ;;  %v2829_v19 = vld [vmem:[%s3690_s8 + $0x60] sm:$0xff]  }
 0x243   :  { %1423 = vmatpush1.bf16.msra.mxu1 %v2373_v56  ;;  %v998_v56 = vld [vmem:[%s3688_s6 + $0x10] sm:$0xff]  ;;  %1454 = vmatprep.mubr.bf16.mxu1 %v2905_v39 }
 0x244   :  { %1424 = vmatprep.subr.bf16.mxu1 %v2382_v31  ;;  %v2378_v40 = vcombine.high %v998_v56, %v1002_v58  ;;  %v2377_v62 = vcombine.low %v998_v56, %v1002_v58  ;;  %v2402_v31 = vcombine.high %v1022_v6, %v1026_v27  ;;  %v1054_v56 = vld [vmem:[%s3688_s6 + $0x1d0] sm:$0xff]  ;;  %v2834_v6 = vld [vmem:[%s3690_s8 + $0xe8] sm:$0xff]  }
 0x245   :  { %v1058_v58 = vld [vmem:[%s3688_s6 + $0x1f0] sm:$0xff]  ;;  %v2835_v27 = vld [vmem:[%s3690_s8 + $0x28] sm:$0xff]  }
 0x247   :  { %1425 = vmatpush1.bf16.msra.mxu1 %v2381_v33  ;;  %v1034_v33 = vld [vmem:[%s3688_s6 + $0x130] sm:$0xff] }
 0x248   :  { %1426 = vmatprep.subr.bf16.mxu1 %v2390_v48  ;;  %v1031_v48 = vld [vmem:[%s3688_s6 + $0x118] sm:$0xff]  ;;  %v2409_v41 = vcombine.low %v1030_v32, %v1034_v33 }
 0x249   :  { %v2412_v35 = vcombine.high %v1031_v48, %v1035_v21 }
 0x24b   :  { %1427 = vmatpush1.bf16.msra.mxu1 %v2389_v47  ;;  %v2403_v47 = vcombine.low %v1023_v28, %v1027_v29  ;;  %v2836_v28 = vld [vmem:[%s3690_s8 + $0xa8] sm:$0xff]   ;;  %v2837_v29 = vld [vmem:[%s3690_s8 + $0x70] sm:$0xff]  }
 0x24c   :  { %1428 = vmatprep.subr.bf16.mxu1 %v2398_v34  ;;  %v2410_v34 = vcombine.high %v1030_v32, %v1034_v33  ;;  %v2842_v32 = vld [vmem:[%s3690_s8 + $0xf8] sm:$0xff]  }
 0x24d   :  { %v2843_v33 = vld [vmem:[%s3690_s8 + $0x38] sm:$0xff]  }
 0x24f   :  { %1429 = vmatpush1.bf16.msra.mxu1 %v2397_v36  ;;  %v1042_v36 = vld [vmem:[%s3688_s6 + $0x170] sm:$0xff] }
 0x250   :  { %1430 = vmatprep.subr.bf16.mxu1 %v2406_v37  ;;  %v1039_v37 = vld [vmem:[%s3688_s6 + $0x158] sm:$0xff]  ;;  %v2417_v52 = vcombine.low %v1038_v11, %v1042_v36 }
 0x251   :  { %v2420_v45 = vcombine.high %v1039_v37, %v1043_v38  ;;  %v2419_v53 = vcombine.low %v1039_v37, %v1043_v38 }
 0x253   :  { %1431 = vmatpush1.bf16.msra.mxu1 %v2405_v43  ;;  %v2411_v43 = vcombine.low %v1031_v48, %v1035_v21  ;;  %v2844_v48 = vld [vmem:[%s3690_s8 + $0xb8] sm:$0xff]   ;;  %v2845_v21 = vld [vmem:[%s3690_s8 + $0x140] sm:$0xff]  }
 0x254   :  { %1432 = vmatprep.subr.bf16.mxu1 %v2414_v44  ;;  %v2418_v44 = vcombine.high %v1038_v11, %v1042_v36  ;;  %v1068_v11 = vsub.s32 1, %v3096_v42  ;;  %v1076_v36 = vsub.s32 3, %v3096_v42 }
 0x257   :  { %1433 = vmatpush1.bf16.msra.mxu1 %v2413_v26  ;;  %v1050_v26 = vld [vmem:[%s3688_s6 + $0x1b0] sm:$0xff] }
 0x258   :  { %1434 = vmatprep.subr.bf16.mxu1 %v2422_v50  ;;  %v1047_v50 = vld [vmem:[%s3688_s6 + $0x198] sm:$0xff]  ;;  %v2425_v60 = vcombine.low %v1046_v49, %v1050_v26 }
 0x25b   :  { %1435 = vmatpush1.bf16.msra.mxu1 %v2421_v51  ;;  %v1051_v51 = vld [vmem:[%s3688_s6 + $0x1b8] sm:$0xff] }
 0x25c   :  { %1436 = vmatprep.subr.bf16.mxu1 %v2430_v25  ;;  %v2426_v25 = vcombine.high %v1046_v49, %v1050_v26 }
 0x25f   :  { %1437 = vmatpush1.bf16.msra.mxu1 %v2429_v54  ;;  %v2428_v54 = vcombine.high %v1047_v50, %v1051_v51 }
 0x260   :  { %1504 = vmatprep.subr.bf16.mxu1 %v2378_v40  ;;  %v1059_v40 = vld [vmem:[%s3688_s6 + $0x1f8] sm:$0xff] }
 0x261   :  { %v2436_v1 = vcombine.high %v1055_v59, %v1059_v40 }
 0x315   :  { %v988_v3 = vpop.f32.mrb[8].mxu1 }
 0x316   :  { %v989_v46 = vadd.f32 %v2364_v2, %v988_v3  ;;  %v2763_v4 = vpop.f32.mrb[9].mxu1  ;;  %v2435_v2 = vcombine.low %v1055_v59, %v1059_v40  ;;  %v2813_v3 = vld [vmem:[%s3690_s8 + $0x40] sm:$0xff]  }
 0x317   :  { %v991_v8 = vpop.f32.mrb[10].mxu1  ;;  %v2815_v4 = vld [vmem:[%s3690_s8] sm:$0xff]  }
 0x318   :  { %v994_v13 = vmax.f32 %v989_v46, 0.0  ;;  %v2764_v14 = vpop.f32.mrb[11].mxu1  ;;  %v2814_v46 = vld [vmem:[%s3690_s8 + $0xc0] sm:$0xff]   ;;  %v2817_v8 = vld [vmem:[%s3690_s8 + $0x48] sm:$0xff]  }
 0x319   :  { %v2822_v14 = vld [vmem:[%s3690_s8 + $0xd0] sm:$0xff]  }
 0x31a   :  { %v3376_v15 = vpack.c.bf16 %v994_v13, %v994_v13  ;;  %v2821_v13 = vld [vmem:[%s3690_s8 + $0x50] sm:$0xff]  }
 0x31c   :  { %1455 = vmatmul.mubr.bf16.vlgmr.msra.gmra.mrb[12].mxu1 %v3376_v15  ;;  %1496 = vmatmul.mubr.bf16.vlgmr.msra.gmra.mrb[64].mxu0 %v3376_v15 }
 0x31d   :  { %1505 = vmatpush1.bf16.msra.mxu1 %v2377_v62  ;;  %1546 = vmatpush1.bf16.msra.mxu0 %v2379_v0  ;;  %v2427_v62 = vcombine.low %v1047_v50, %v1051_v51  ;;  %v2434_v0 = vcombine.high %v1054_v56, %v1058_v58 }
 0x31e   :  { %1506 = vmatprep.subr.bf16.mxu1 %v2386_v16  ;;  %1547 = vmatprep.subr.bf16.mxu0 %v2388_v55  ;;  %v2824_v16 = vld [vmem:[%s3690_s8 + $0x90] sm:$0xff]   ;;  %v2825_v55 = vld [vmem:[%s3690_s8 + $0x58] sm:$0xff]  }
 0x31f   :  { %1536 = vmatprep.mubr.bf16.mxu1 %v2905_v39  ;;  %1577 = vmatprep.mubr.bf16.mxu0 %v2905_v39  ;;  %v2433_v39 = vcombine.low %v1054_v56, %v1058_v58 }
 0x321   :  { %1507 = vmatpush1.bf16.msra.mxu1 %v2385_v61  ;;  %1548 = vmatpush1.bf16.msra.mxu0 %v2387_v22  ;;  %v2830_v61 = vld [vmem:[%s3690_s8 + $0xe0] sm:$0xff]  }
 0x322   :  { %1508 = vmatprep.subr.bf16.mxu1 %v2394_v23  ;;  %1549 = vmatprep.subr.bf16.mxu0 %v2396_v24  ;;  %v2831_v22 = vld [vmem:[%s3690_s8 + $0x20] sm:$0xff]   ;;  %v2833_v24 = vld [vmem:[%s3690_s8 + $0x68] sm:$0xff]  }
 0x323   :  { %v2832_v23 = vld [vmem:[%s3690_s8 + $0xa0] sm:$0xff]  }
 0x325   :  { %1509 = vmatpush1.bf16.msra.mxu1 %v2393_v30  ;;  %1550 = vmatpush1.bf16.msra.mxu0 %v2395_v5  ;;  %v2838_v30 = vld [vmem:[%s3690_s8 + $0xf0] sm:$0xff]  }
 0x326   :  { %1510 = vmatprep.subr.bf16.mxu1 %v2402_v31  ;;  %1551 = vmatprep.subr.bf16.mxu0 %v2404_v12  ;;  %v2839_v5 = vld [vmem:[%s3690_s8 + $0x30] sm:$0xff]   ;;  %v2841_v12 = vld [vmem:[%s3690_s8 + $0x78] sm:$0xff]  }
 0x327   :  { %v2840_v31 = vld [vmem:[%s3690_s8 + $0xb0] sm:$0xff]  }
 0x329   :  { %1511 = vmatpush1.bf16.msra.mxu1 %v2401_v20  ;;  %1552 = vmatpush1.bf16.msra.mxu0 %v2403_v47  ;;  %v2846_v20 = vld [vmem:[%s3690_s8 + $0x1c0] sm:$0xff]   ;;  %v1064_v47 = vsub.s32 0, %v3096_v42 }
 0x32a   :  { %1512 = vmatprep.subr.bf16.mxu1 %v2410_v34  ;;  %1553 = vmatprep.subr.bf16.mxu0 %v2412_v35  ;;  %v1072_v34 = vsub.s32 2, %v3096_v42  ;;  %v3561_v35 = vld [vmem:[%s3689_s7] sm:$0xff] }
 0x32b   :  { %v1065_v37 = vrot.slane %v3561_v35, %v1064_v47  ;;  %v2874_v47 = vld [vmem:[%s3690_s8 + $0x1f8] sm:$0xff]  }
 0x32c   :  { %v1073_v38 = vrot.slane %v3561_v35, %v1072_v34 }
 0x32d   :  { %1513 = vmatpush1.bf16.msra.mxu1 %v2409_v41  ;;  %1554 = vmatpush1.bf16.msra.mxu0 %v2411_v43  ;;  %v1069_v41 = vrot.slane %v3561_v35, %v1068_v11  ;;  %v1077_v43 = vrot.slane %v3561_v35, %v1076_v36 }
 0x32e   :  { %1514 = vmatprep.subr.bf16.mxu1 %v2418_v44  ;;  %1555 = vmatprep.subr.bf16.mxu0 %v2420_v45 }
 0x331   :  { %1515 = vmatpush1.bf16.msra.mxu1 %v2417_v52  ;;  %1556 = vmatpush1.bf16.msra.mxu0 %v2419_v53 }
 0x332   :  { %1516 = vmatprep.subr.bf16.mxu1 %v2426_v25  ;;  %1557 = vmatprep.subr.bf16.mxu0 %v2428_v54 }
 0x335   :  { %1517 = vmatpush1.bf16.msra.mxu1 %v2425_v60  ;;  %1558 = vmatpush1.bf16.msra.mxu0 %v2427_v62 }
 0x336   :  { %1518 = vmatprep.subr.bf16.mxu1 %v2434_v0  ;;  %1559 = vmatprep.subr.bf16.mxu0 %v2436_v1 }
 0x339   :  { %1519 = vmatpush1.bf16.msra.mxu1 %v2433_v39  ;;  %1560 = vmatpush1.bf16.msra.mxu0 %v2435_v2  ;;  %v2847_v39 = vld [vmem:[%s3690_s8 + $0x100] sm:$0xff]  }
 0x33a   :  { %2589 = vmatprep.subr.bf16.mxu1 %v2813_v3  ;;  %2611 = vmatprep.subr.bf16.mxu0 %v2814_v46  ;;  %v2848_v2 = vld [vmem:[%s3690_s8 + $0x180] sm:$0xff]  }
 0x33c   :  { %1537 = vmatmul.mubr.bf16.vlgmr.msra.gmra.mrb[16].mxu1 %v3376_v15  ;;  %1578 = vmatmul.mubr.bf16.vlgmr.msra.gmra.mrb[68].mxu0 %v3376_v15  ;;  %v2823_v15 = vld [vmem:[%s3690_s8 + $0x10] sm:$0xff]  }
 0x33d   :  { %2590 = vmatpush3.bf16.msra.mxu1 %v2815_v4  ;;  %2612 = vmatpush3.bf16.msra.mxu0 %v2816_v7  ;;  %v2849_v4 = vld [vmem:[%s3690_s8 + $0x148] sm:$0xff]  }
 0x33e   :  { %2591 = vmatprep.subr.bf16.mxu1 %v2817_v8  ;;  %2613 = vmatprep.subr.bf16.mxu0 %v2818_v9  ;;  %v2850_v7 = vld [vmem:[%s3690_s8 + $0x1c8] sm:$0xff]  }
 0x33f   :  { %v2851_v8 = vld [vmem:[%s3690_s8 + $0x108] sm:$0xff]  }
 0x340   :  { %v2852_v9 = vld [vmem:[%s3690_s8 + $0x188] sm:$0xff]  }
 0x341   :  { %2592 = vmatpush3.bf16.msra.mxu1 %v2819_v10  ;;  %2614 = vmatpush3.bf16.msra.mxu0 %v2820_v57  ;;  %v2853_v10 = vld [vmem:[%s3690_s8 + $0x150] sm:$0xff]  }
 0x342   :  { %2593 = vmatprep.subr.bf16.mxu1 %v2821_v13  ;;  %2615 = vmatprep.subr.bf16.mxu0 %v2822_v14  ;;  %v2854_v57 = vld [vmem:[%s3690_s8 + $0x1d0] sm:$0xff]  }
 0x343   :  { %v2855_v13 = vld [vmem:[%s3690_s8 + $0x110] sm:$0xff]  }
 0x344   :  { %v2856_v14 = vld [vmem:[%s3690_s8 + $0x190] sm:$0xff]  }
 0x345   :  { %2594 = vmatpush3.bf16.msra.mxu1 %v2823_v15  ;;  %2616 = vmatpush3.bf16.msra.mxu0 %v2824_v16  ;;  %v2857_v15 = vld [vmem:[%s3690_s8 + $0x158] sm:$0xff]  }
 0x346   :  { %2595 = vmatprep.subr.bf16.mxu1 %v2825_v55  ;;  %2617 = vmatprep.subr.bf16.mxu0 %v2826_v17  ;;  %v2858_v16 = vld [vmem:[%s3690_s8 + $0x1d8] sm:$0xff]  }
 0x347   :  { %v2859_v55 = vld [vmem:[%s3690_s8 + $0x118] sm:$0xff]  }
 0x348   :  { %v2860_v17 = vld [vmem:[%s3690_s8 + $0x198] sm:$0xff]  }
 0x349   :  { %2596 = vmatpush3.bf16.msra.mxu1 %v2827_v63  ;;  %2618 = vmatpush3.bf16.msra.mxu0 %v2828_v18  ;;  %v2861_v63 = vld [vmem:[%s3690_s8 + $0x160] sm:$0xff]  }
 0x34a   :  { %2597 = vmatprep.subr.bf16.mxu1 %v2829_v19  ;;  %2619 = vmatprep.subr.bf16.mxu0 %v2830_v61  ;;  %v2862_v18 = vld [vmem:[%s3690_s8 + $0x1e0] sm:$0xff]  }
 0x34b   :  { %v2863_v19 = vld [vmem:[%s3690_s8 + $0x120] sm:$0xff]  }
 0x34c   :  { %v2864_v61 = vld [vmem:[%s3690_s8 + $0x1a0] sm:$0xff]  }
 0x34d   :  { %2598 = vmatpush3.bf16.msra.mxu1 %v2831_v22  ;;  %2620 = vmatpush3.bf16.msra.mxu0 %v2832_v23  ;;  %v2865_v22 = vld [vmem:[%s3690_s8 + $0x168] sm:$0xff]  }
 0x34e   :  { %2599 = vmatprep.subr.bf16.mxu1 %v2833_v24  ;;  %2621 = vmatprep.subr.bf16.mxu0 %v2834_v6  ;;  %v2866_v23 = vld [vmem:[%s3690_s8 + $0x1e8] sm:$0xff]   ;;  %v1080_v24 = vsub.s32 4, %v3096_v42  ;;  %v1088_v6 = vsub.s32 6, %v3096_v42 }
 0x351   :  { %2600 = vmatpush3.bf16.msra.mxu1 %v2835_v27  ;;  %2622 = vmatpush3.bf16.msra.mxu0 %v2836_v28  ;;  %v2867_v27 = vld [vmem:[%s3690_s8 + $0x128] sm:$0xff]  }
 0x352   :  { %2601 = vmatprep.subr.bf16.mxu1 %v2837_v29  ;;  %2623 = vmatprep.subr.bf16.mxu0 %v2838_v30  ;;  %v2868_v28 = vld [vmem:[%s3690_s8 + $0x1a8] sm:$0xff]   ;;  %v1084_v29 = vsub.s32 5, %v3096_v42  ;;  %v1092_v30 = vsub.s32 7, %v3096_v42 }
 0x354   :  { %v1093_v42 = vrot.slane %v3561_v35, %v1092_v30 }
 0x355   :  { %2602 = vmatpush3.bf16.msra.mxu1 %v2839_v5  ;;  %2624 = vmatpush3.bf16.msra.mxu0 %v2840_v31  ;;  %v2869_v5 = vld [vmem:[%s3690_s8 + $0x170] sm:$0xff]  }
 0x356   :  { %2603 = vmatprep.subr.bf16.mxu1 %v2841_v12  ;;  %2625 = vmatprep.subr.bf16.mxu0 %v2842_v32  ;;  %v2870_v31 = vld [vmem:[%s3690_s8 + $0x1f0] sm:$0xff]   ;;  %v1081_v12 = vrot.slane %v3561_v35, %v1080_v24  ;;  %v1089_v32 = vrot.slane %v3561_v35, %v1088_v6 }
 0x359   :  { %2604 = vmatpush3.bf16.msra.mxu1 %v2843_v33  ;;  %2626 = vmatpush3.bf16.msra.mxu0 %v2844_v48  ;;  %v1085_v33 = vrot.slane %v3561_v35, %v1084_v29  ;;  %v2871_v48 = vld [vmem:[%s3690_s8 + $0x130] sm:$0xff]  }
 0x35a   :  { %2633 = vmatprep.subr.bf16.mxu1 %v2845_v21  ;;  %2655 = vmatprep.subr.bf16.mxu0 %v2846_v20  ;;  %v2872_v21 = vld [vmem:[%s3690_s8 + $0x1b0] sm:$0xff]   ;;  %v2873_v20 = vld [vmem:[%s3690_s8 + $0x178] sm:$0xff]  }
 0x3ef   :  { %v1456_v44 = vpop.f32.mrb[12].mxu1  ;;  %v1497_v45 = vpop.f32.mrb[64].mxu0 }
 0x3f0   :  { %v1457_v49 = vadd.f32 %v1456_v44, %v1065_v37  ;;  %v1498_v26 = vadd.f32 %v1497_v45, %v1073_v38  ;;  %v1458_v50 = vpop.f32.mrb[13].mxu1  ;;  %v1499_v51 = vpop.f32.mrb[65].mxu0 }
 0x3f1   :  { %v1459_v52 = vadd.f32 %v1458_v50, %v1069_v41  ;;  %v1500_v53 = vadd.f32 %v1499_v51, %v1077_v43  ;;  %v1460_v25 = vpop.f32.mrb[14].mxu1  ;;  %v1501_v54 = vpop.f32.mrb[66].mxu0 }
 0x3f2   :  { %v1586_v56 = vmax.f32 %v1457_v49, 0.0  ;;  %v1588_v58 = vmax.f32 %v1498_v26, 0.0  ;;  %v1461_v59 = vpop.f32.mrb[15].mxu1  ;;  %v1502_v40 = vpop.f32.mrb[67].mxu0  ;;  %v2875_v49 = vld [vmem:[%s3690_s8 + $0x138] sm:$0xff]  }
 0x3f3   :  { %v1587_v60 = vmax.f32 %v1459_v52, 0.0  ;;  %v1589_v62 = vmax.f32 %v1500_v53, 0.0  ;;  %v2876_v26 = vld [vmem:[%s3690_s8 + $0x1b8] sm:$0xff]  }
 0x3f4   :  { %v1594_v3 = vpack.c.bf16 %v1586_v56, %v1586_v56  ;;  %v1596_v46 = vpack.c.bf16 %v1588_v58, %v1588_v58 }
 0x3f5   :  { %v1595_v0 = vpack.c.bf16 %v1587_v60, %v1587_v60  ;;  %v1597_v1 = vpack.c.bf16 %v1589_v62, %v1589_v62 }
 0x3f7   :  { %2153 = vmatprep.mubr.bf16.mxu1 %v1595_v0  ;;  %2193 = vmatprep.mubr.bf16.mxu0 %v1597_v1  ;;  %v2437_v0 = vld [vmem:[%s3691_s9] ss:$0 sm:$0xff]  ;;  %s2906_s9 = smov [#allocation2]  }
 0x3f8   :  { %2154 = vmatmul.mubr.bf16.vlgmr.msra.gmra.mrb[20].mxu1 %v1594_v3  ;;  %2194 = vmatmul.mubr.bf16.vlgmr.msra.gmra.mrb[72].mxu0 %v1596_v46  ;;  %s2288_s30 = sshll.u32 %s2906_s9, 4  ;;  %s2289_s30 = int_to_ptr.vmem [resolvable:$true] %s2288_s30 }
 0x3f9   :  { %2634 = vmatpush3.bf16.msra.mxu1 %v2847_v39  ;;  %2656 = vmatpush3.bf16.msra.mxu0 %v2848_v2  ;;  %s2877_s11 = scalar_lea.vmem %s2289_s30, 32  ;;  %p2882_p1 = scmp.lt.s32.totalorder %s2289_s30, %s2289_s30 }
 0x3fa   :  { %2635 = vmatprep.subr.bf16.mxu1 %v2849_v4  ;;  %2657 = vmatprep.subr.bf16.mxu0 %v2850_v7  ;;  %p2878_p0 = scmp.ne.s32.totalorder %s2289_s30, %s2877_s11  ;;  %p2883_p2 = scmp.lt.s32.totalorder %s2877_s11, %s2877_s11 }
 0x3fc   :  { %p2884_p3 = por %p2883_p2, %p2882_p1 }
 0x3fd   :  { %2636 = vmatpush3.bf16.msra.mxu1 %v2851_v8  ;;  %2658 = vmatpush3.bf16.msra.mxu0 %v2852_v9 }
 0x3fe   :  { %2637 = vmatprep.subr.bf16.mxu1 %v2853_v10  ;;  %2659 = vmatprep.subr.bf16.mxu0 %v2854_v57  ;;  %p2885_p4 = pnand %p2884_p3, %p2878_p0 }
 0x401   :  { %2638 = vmatpush3.bf16.msra.mxu1 %v2855_v13  ;;  %2660 = vmatpush3.bf16.msra.mxu0 %v2856_v14 }
 0x402   :  { %2639 = vmatprep.subr.bf16.mxu1 %v2857_v15  ;;  %2661 = vmatprep.subr.bf16.mxu0 %v2858_v16 }
 0x405   :  { %2640 = vmatpush3.bf16.msra.mxu1 %v2859_v55  ;;  %2662 = vmatpush3.bf16.msra.mxu0 %v2860_v17 }
 0x406   :  { %2641 = vmatprep.subr.bf16.mxu1 %v2861_v63  ;;  %2663 = vmatprep.subr.bf16.mxu0 %v2862_v18 }
 0x409   :  { %2642 = vmatpush3.bf16.msra.mxu1 %v2863_v19  ;;  %2664 = vmatpush3.bf16.msra.mxu0 %v2864_v61 }
 0x40a   :  { %2643 = vmatprep.subr.bf16.mxu1 %v2865_v22  ;;  %2665 = vmatprep.subr.bf16.mxu0 %v2866_v23 }
 0x40d   :  { %2644 = vmatpush3.bf16.msra.mxu1 %v2867_v27  ;;  %2666 = vmatpush3.bf16.msra.mxu0 %v2868_v28 }
 0x40e   :  { %2645 = vmatprep.subr.bf16.mxu1 %v2869_v5  ;;  %2667 = vmatprep.subr.bf16.mxu0 %v2870_v31 }
 0x40f   :  { %v1538_v34 = vpop.f32.mrb[16].mxu1  ;;  %v1579_v35 = vpop.f32.mrb[68].mxu0 }
 0x410   :  { %v1539_v11 = vadd.f32 %v1538_v34, %v1081_v12  ;;  %v1580_v36 = vadd.f32 %v1579_v35, %v1089_v32  ;;  %v1540_v37 = vpop.f32.mrb[17].mxu1  ;;  %v1581_v38 = vpop.f32.mrb[69].mxu0 }
 0x411   :  { %v1541_v41 = vadd.f32 %v1540_v37, %v1085_v33  ;;  %v1582_v43 = vadd.f32 %v1581_v38, %v1093_v42  ;;  %v1542_v44 = vpop.f32.mrb[18].mxu1  ;;  %v1583_v45 = vpop.f32.mrb[70].mxu0  ;;  %2646 = vmatpush3.bf16.msra.mxu1 %v2871_v48  ;;  %2668 = vmatpush3.bf16.msra.mxu0 %v2872_v21 }
 0x412   :  { %v1590_v50 = vmax.f32 %v1539_v11, 0.0  ;;  %v1592_v51 = vmax.f32 %v1580_v36, 0.0  ;;  %v1543_v52 = vpop.f32.mrb[19].mxu1  ;;  %v1584_v53 = vpop.f32.mrb[71].mxu0  ;;  %2647 = vmatprep.subr.bf16.mxu1 %v2873_v20  ;;  %2669 = vmatprep.subr.bf16.mxu0 %v2874_v47 }
 0x413   :  { %v1591_v25 = vmax.f32 %v1541_v41, 0.0  ;;  %v1593_v54 = vmax.f32 %v1582_v43, 0.0 }
 0x414   :  { %v1598_v59 = vpack.c.bf16 %v1590_v50, %v1590_v50  ;;  %v1600_v40 = vpack.c.bf16 %v1592_v51, %v1592_v51 }
 0x415   :  { %v1599_v56 = vpack.c.bf16 %v1591_v25, %v1591_v25  ;;  %v1601_v58 = vpack.c.bf16 %v1593_v54, %v1593_v54  ;;  %2648 = vmatpush3.bf16.msra.mxu1 %v2875_v49  ;;  %2670 = vmatpush3.bf16.msra.mxu0 %v2876_v26 }
 0x417   :  { %2233 = vmatprep.mubr.bf16.mxu1 %v1599_v56  ;;  %2273 = vmatprep.mubr.bf16.mxu0 %v1601_v58 }
 0x418   :  { %2234 = vmatmul.mubr.bf16.vlgmr.msra.gmra.mrb[24].mxu1 %v1598_v59  ;;  %2274 = vmatmul.mubr.bf16.vlgmr.msra.gmra.mrb[76].mxu0 %v1600_v40 }
 0x4cb   :  { %v2605_v60 = vpop.f32.mrb[20].mxu1  ;;  %v2627_v62 = vpop.f32.mrb[72].mxu0 }
 0x4cc   :  { %v2606_v1 = vpop.f32.mrb[21].mxu1  ;;  %v2628_v39 = vpop.f32.mrb[73].mxu0 }
 0x4cd   :  { %v2607_v2 = vadd.f32 %v2606_v1, %v2605_v60  ;;  %v2629_v3 = vadd.f32 %v2628_v39, %v2627_v62  ;;  %v2608_v46 = vpop.f32.mrb[22].mxu1  ;;  %v2630_v4 = vpop.f32.mrb[74].mxu0 }
 0x4ce   :  { %v2609_v7 = vpop.f32.mrb[23].mxu1  ;;  %v2631_v8 = vpop.f32.mrb[75].mxu0 }
 0x4cf   :  { %v2156_v9 = vadd.f32 %v2607_v2, %v2437_v0 }
 0x4d1   :  { %v2196_v10 = vadd.f32 %v2629_v3, %v2156_v9 }
 0x4eb   :  { %v2649_v57 = vpop.f32.mrb[24].mxu1  ;;  %v2671_v13 = vpop.f32.mrb[76].mxu0 }
 0x4ec   :  { %v2650_v14 = vpop.f32.mrb[25].mxu1  ;;  %v2672_v15 = vpop.f32.mrb[77].mxu0 }
 0x4ed   :  { %v2651_v16 = vadd.f32 %v2650_v14, %v2649_v57  ;;  %v2673_v55 = vadd.f32 %v2672_v15, %v2671_v13  ;;  %v2652_v17 = vpop.f32.mrb[26].mxu1  ;;  %v2674_v63 = vpop.f32.mrb[78].mxu0 }
 0x4ee   :  { %v2653_v18 = vpop.f32.mrb[27].mxu1  ;;  %v2675_v19 = vpop.f32.mrb[79].mxu0 }
 0x4ef   :  { %v2236_v61 = vadd.f32 %v2651_v16, %v2196_v10 }
 0x4f1   :  { %v2276_v22 = vadd.f32 %v2673_v55, %v2236_v61 }
 0x4f3   :  { %2281 = vst [vmem:[#allocation2] sm:$0x3] %v2276_v22 }
 0x4f4   :  { %2888 = shalt.err (!%p2885_p4)
}
 0x4f5   :  { %s2889_s14 = scalar_lea.hbm %s3692_s10, 32 }
 0x4f6   :  { %p2890_p5 = scmp.ne.s32.totalorder %s3692_s10, %s2889_s14  ;;  %p2893_p6 = scmp.lt.u32.totalorder %s2889_s14, %s3692_s10 }
 0x4f8   :  { %p2895_p7 = pnand %p2893_p6, %p2890_p5 }
 0x4fa   :  { %2898 = shalt.err (!%p2895_p7)
}
 0x4fb   :  { %2291 = dma.vmem_to_hbm [thread:$0]  %s2289_s30, 32, %s3692_s10, [#allocation3]  }
 0x4fc   :  { %2899 = dma.done.wait [#allocation3], 32  }
 0x4fd   :  { %2900 = vsyncadd [#allocation3], 4294967264 }
 0x4fe   :  { %2295 = vsyncpa [#allocation3], 1 }

</bundles_post_ra>
